<compile_context>
chip_gen: v7x
topology: tpu7x:2x2x1
jax: 0.10.0
libtpu: 0.0.40
codegen_flags: <defaults>
</compile_context>

<pallas_src>
import jax
import jax.numpy as jnp
from jax.experimental import pallas as pl
from jax.experimental.pallas import tpu as pltpu


def _round_up(v, m):
    return ((v + m - 1) // m) * m


def _pick_batch_tile(B, Np, Fp, Fop, itemsize, target_rows=256,
                     vmem_budget_bytes=24 * 1024 * 1024):
    """Graphs per grid step: enough rows to fill the MXU, bounded by a
    double-buffered VMEM budget, while keeping >= 2 grid steps (megacore)."""
    per_graph = (Np * Np + Np * Fp) * itemsize + Np * Fop * 4
    bt = max(1, -(-target_rows // Np))                              # fill MXU rows
    bt = min(bt, max(1, vmem_budget_bytes // max(1, 2 * per_graph)))  # VMEM cap
    if B >= 2:
        bt = min(bt, max(1, B // 2))                                # >=2 grid steps
    return max(1, min(bt, B))


def _make_degin_kernel(has_mask: bool, add_loop: bool):
    def kernel(eps_ref, x_ref, adj_ref, *rest):
        if has_mask:
            mask_ref, w1_ref, b1_ref, w2_ref, b2_ref, out_ref = rest
        else:
            mask_ref = None
            w1_ref, b1_ref, w2_ref, b2_ref, out_ref = rest

        bt, n, fp = x_ref.shape
        fout_p = out_ref.shape[-1]

        x = x_ref[...]                       # (Bt, Np, Fp)  compute dtype
        adj = adj_ref[...]                   # (Bt, Np, Np)  compute dtype

        # ---- aggregation: adj @ x on the MXU, f32 accumulation ----
        agg = jnp.einsum('bnm,bmf->bnf', adj, x,
                         preferred_element_type=jnp.float32)

        # ---- GIN self-loop update, done in f32 ----
        if add_loop:
            eps = eps_ref[0]                 # scalar from SMEM
            gin = (1.0 + eps) * x.astype(jnp.float32) + agg
        else:
            gin = agg

        # ---- MLP: collapse rows so each dot sees Bt*Np rows (MXU fill) ----
        gin2 = gin.reshape(bt * n, fp).astype(w1_ref.dtype)
        h = jnp.dot(gin2, w1_ref[...],
                    preferred_element_type=jnp.float32) + b1_ref[...]
        h = jnp.maximum(h, 0.0).astype(w2_ref.dtype)
        o = jnp.dot(h, w2_ref[...],
                    preferred_element_type=jnp.float32) + b2_ref[...]
        o = o.reshape(bt, n, fout_p)

        if has_mask:
            o = o * mask_ref[...]            # (Bt, Np, 1) f32 broadcast

        out_ref[...] = o.astype(out_ref.dtype)

    return kernel


def _pad_to(a, shape):
    pads = [(0, s - d) for d, s in zip(a.shape, shape)]
    if all(p == (0, 0) for p in pads):
        return a
    return jnp.pad(a, pads)


def degin_conv(x, adj, eps, w1, b1, w2, b2, mask=None, add_loop=True,
               compute_dtype=None, batch_tile=None):
    """x: (B,N,F) or (N,F); adj: (B,N,N) or (N,N) (batch-broadcastable);
    mask: (B,N) bool or None.  Matches DeGINConv.forward with nn = MLP."""
    squeeze_out = (x.ndim == 2)
    if x.ndim == 2:
        x = x[None]
    if adj.ndim == 2:
        adj = adj[None]
    out_dtype = x.dtype
    B, N, F = x.shape
    if adj.shape[0] == 1 and B > 1:          # shared adjacency for the batch
        adj = jnp.broadcast_to(adj, (B, N, N))
    H = w1.shape[1]
    Fout = w2.shape[1]
    if compute_dtype is None:
        compute_dtype = x.dtype
    compute_dtype = jnp.dtype(compute_dtype)
    comp_size = compute_dtype.itemsize

    # ---- lane/sublane-dense padded sizes ----
    Fp = _round_up(F, 128)
    Hp = _round_up(H, 128)
    Fop = _round_up(Fout, 128)
    Np = _round_up(N, 8)

    bt = batch_tile or _pick_batch_tile(B, Np, Fp, Fop, comp_size)
    Bp = _round_up(B, bt)

    # ---- pad + cast inputs (zero padding is exact for this op) ----
    xp = _pad_to(x.astype(compute_dtype), (Bp, Np, Fp))
    adjp = _pad_to(adj.astype(compute_dtype), (Bp, Np, Np))
    w1p = _pad_to(w1.astype(compute_dtype), (Fp, Hp))
    w2p = _pad_to(w2.astype(compute_dtype), (Hp, Fop))
    b1p = _pad_to(b1.reshape(1, H).astype(jnp.float32), (1, Hp))
    b2p = _pad_to(b2.reshape(1, Fout).astype(jnp.float32), (1, Fop))
    eps_arr = jnp.asarray(eps, dtype=jnp.float32).reshape((1,))

    has_mask = mask is not None
    inputs = [eps_arr, xp, adjp]
    in_specs = [
        pl.BlockSpec(memory_space=pltpu.SMEM),                  # eps scalar
        pl.BlockSpec((bt, Np, Fp), lambda b: (b, 0, 0)),        # x
        pl.BlockSpec((bt, Np, Np), lambda b: (b, 0, 0)),        # adj
    ]
    if has_mask:
        mask_f = mask.reshape(B, N).astype(jnp.float32)[..., None]
        inputs.append(_pad_to(mask_f, (Bp, Np, 1)))
        in_specs.append(pl.BlockSpec((bt, Np, 1), lambda b: (b, 0, 0)))
    inputs += [w1p, b1p, w2p, b2p]
    in_specs += [
        pl.BlockSpec((Fp, Hp), lambda b: (0, 0)),               # W1 (resident)
        pl.BlockSpec((1, Hp), lambda b: (0, 0)),                # b1
        pl.BlockSpec((Hp, Fop), lambda b: (0, 0)),              # W2
        pl.BlockSpec((1, Fop), lambda b: (0, 0)),               # b2
    ]

    # ---- VMEM budget: double-buffered streams + resident weights + temps ----
    out_size = jnp.dtype(out_dtype).itemsize
    blk_bytes = (bt * Np * Fp + bt * Np * Np) * comp_size + bt * Np * Fop * out_size
    if has_mask:
        blk_bytes += bt * Np * 4
    weight_bytes = (Fp * Hp + Hp * Fop) * comp_size + (Hp + Fop) * 4
    interm_bytes = 4 * bt * Np * max(Fp, Hp, Fop) * 4
    need = 2 * blk_bytes + 2 * weight_bytes + interm_bytes
    vmem_limit = int(min(max(2 * need, 32 * 1024 * 1024), 48 * 1024 * 1024))

    out = pl.pallas_call(
        _make_degin_kernel(has_mask, add_loop),
        out_shape=jax.ShapeDtypeStruct((Bp, Np, Fop), out_dtype),
        grid_spec=pltpu.PrefetchScalarGridSpec(
            num_scalar_prefetch=0,
            grid=(Bp // bt,),
            in_specs=in_specs,
            out_specs=pl.BlockSpec((bt, Np, Fop), lambda b: (b, 0, 0)),
        ),
        compiler_params=pltpu.CompilerParams(
            dimension_semantics=("parallel",),
            vmem_limit_bytes=vmem_limit),
    )(*inputs)

    out = out[:B, :N, :Fout]
    if squeeze_out:
        out = out[0]
    return out


def degin_reference(x, adj, eps, w1, b1, w2, b2, mask=None, add_loop=True):
    if x.ndim == 2:
        x = x[None]
    if adj.ndim == 2:
        adj = adj[None]
    out = jnp.matmul(adj, x)
    if add_loop:
        out = (1.0 + eps) * x + out
    out = jnp.maximum(out @ w1 + b1, 0.0) @ w2 + b2
    if mask is not None:
        B, N, _ = adj.shape
        out = out * mask.reshape(B, N, 1).astype(x.dtype)
    return out


if __name__ == "__main__":
    # Small deterministic problem: B=2 graphs, N=16 nodes, F=32 features,
    # nn = Linear(32 -> 64) -> ReLU -> Linear(64 -> 32).
    B, N, F, H, Fout = 2, 16, 32, 64, 32
    key = jax.random.PRNGKey(0)
    kx, ka, kw1, kb1, kw2, kb2, km = jax.random.split(key, 7)

    x = jax.random.normal(kx, (B, N, F), dtype=jnp.float32)
    adj = (jax.random.uniform(ka, (B, N, N)) > 0.7).astype(jnp.float32)

    w1 = jax.random.uniform(kw1, (F, H), minval=-1.0, maxval=1.0) * (1.0 / F ** 0.5)
    b1 = jax.random.uniform(kb1, (H,), minval=-1.0, maxval=1.0) * (1.0 / F ** 0.5)
    w2 = jax.random.uniform(kw2, (H, Fout), minval=-1.0, maxval=1.0) * (1.0 / H ** 0.5)
    b2 = jax.random.uniform(kb2, (Fout,), minval=-1.0, maxval=1.0) * (1.0 / H ** 0.5)

    eps = jnp.float32(7.5)  # initial_eps from the module
    mask = jax.random.uniform(km, (B, N)) > 0.2  # bool node mask

    # f32 path with mask
    out = jax.block_until_ready(degin_conv(x, adj, eps, w1, b1, w2, b2, mask=mask))
    ref = degin_reference(x, adj, eps, w1, b1, w2, b2, mask=mask)
    assert out.shape == (B, N, Fout)
    assert jnp.allclose(out, ref, atol=1e-4, rtol=1e-4), "f32 masked path mismatch"

    # f32 path without mask (specialized kernel: no mask stream / multiply)
    out_nm = jax.block_until_ready(degin_conv(x, adj, eps, w1, b1, w2, b2, mask=None))
    ref_nm = degin_reference(x, adj, eps, w1, b1, w2, b2, mask=None)
    assert jnp.allclose(out_nm, ref_nm, atol=1e-4, rtol=1e-4), "f32 no-mask path mismatch"

    # bf16 compute path (adjacency cast is exact since adj is {0,1};
    # all dots accumulate in f32, epilogue in f32) — looser tolerance.
    out_bf = jax.block_until_ready(
        degin_conv(x, adj, eps, w1, b1, w2, b2, mask=mask,
                   compute_dtype=jnp.bfloat16))
    assert jnp.allclose(out_bf.astype(jnp.float32), ref, atol=2.5e-1, rtol=5e-2), \
        "bf16 path mismatch"

    print("KERNEL_OK")
</pallas_src>

<mosaic_0001>
module attributes {stable_mosaic.version = 11 : i64} {
  func.func @kernel(%arg0: i32, %arg1: memref<1xf32, #tpu.memory_space<smem>>, %arg2: memref<1x16x128xf32, #tpu.memory_space<vmem>>, %arg3: memref<1x16x16xf32, #tpu.memory_space<vmem>>, %arg4: memref<1x16x1xf32, #tpu.memory_space<vmem>>, %arg5: memref<128x128xf32, #tpu.memory_space<vmem>>, %arg6: memref<1x128xf32, #tpu.memory_space<vmem>>, %arg7: memref<128x128xf32, #tpu.memory_space<vmem>>, %arg8: memref<1x128xf32, #tpu.memory_space<vmem>>, %arg9: memref<1x16x128xf32, #tpu.memory_space<vmem>>) attributes {dimension_semantics = [#tpu.dimension_semantics<parallel>], iteration_bounds = array<i64: 2>, scalar_prefetch = 0 : i64, scratch_operands = 0 : i64, tpu.core_type = #tpu.core_type<tc>, window_params = [{transform_indices = @transform_0, window_bounds = array<i64: 1>}, {transform_indices = @transform_1, window_bounds = array<i64: 1, 16, 128>}, {transform_indices = @transform_2, window_bounds = array<i64: 1, 16, 16>}, {transform_indices = @transform_3, window_bounds = array<i64: 1, 16, 1>}, {pipeline_mode = #tpu.pipeline_mode<synchronous>, transform_indices = @transform_4, window_bounds = array<i64: 128, 128>}, {pipeline_mode = #tpu.pipeline_mode<synchronous>, transform_indices = @transform_5, window_bounds = array<i64: 1, 128>}, {pipeline_mode = #tpu.pipeline_mode<synchronous>, transform_indices = @transform_6, window_bounds = array<i64: 128, 128>}, {pipeline_mode = #tpu.pipeline_mode<synchronous>, transform_indices = @transform_7, window_bounds = array<i64: 1, 128>}, {transform_indices = @transform_8, window_bounds = array<i64: 1, 16, 128>}]} {
    %c0 = arith.constant 0 : index
    %c0_0 = arith.constant 0 : index
    %c0_1 = arith.constant 0 : index
    %0 = vector.load %arg2[%c0, %c0_0, %c0_1] : memref<1x16x128xf32, #tpu.memory_space<vmem>>, vector<1x16x128xf32>
    %c0_2 = arith.constant 0 : index
    %c0_3 = arith.constant 0 : index
    %c0_4 = arith.constant 0 : index
    %1 = vector.load %arg3[%c0_2, %c0_3, %c0_4] : memref<1x16x16xf32, #tpu.memory_space<vmem>>, vector<1x16x16xf32>
    "tpu.trace_start"() <{level = 10 : i32, message = "bnm,bmf->bnf"}> : () -> ()
    %cst = arith.constant dense<0.000000e+00> : vector<1x16x128xf32>
    %2 = tpu.matmul %1, %0, %cst {dimension_numbers = #tpu.dot_dimension_numbers<[2], [1], [1], [2], [0, 0, 0, 1, 1, 2], [0], [0]>} : vector<1x16x16xf32>, vector<1x16x128xf32>, vector<1x16x128xf32> -> vector<1x16x128xf32>
    "tpu.trace_stop"() : () -> ()
    %c0_5 = arith.constant 0 : index
    %3 = memref.load %arg1[%c0_5] : memref<1xf32, #tpu.memory_space<smem>>
    %cst_6 = arith.constant 1.000000e+00 : f32
    %4 = arith.addf %cst_6, %3 : f32
    %5 = vector.broadcast %4 : f32 to vector<1x16x128xf32>
    %6 = arith.mulf %5, %0 : vector<1x16x128xf32>
    %7 = arith.addf %6, %2 : vector<1x16x128xf32>
    %8 = vector.shape_cast %7 : vector<1x16x128xf32> to vector<16x128xf32>
    %c0_7 = arith.constant 0 : index
    %c0_8 = arith.constant 0 : index
    %9 = vector.load %arg5[%c0_7, %c0_8] : memref<128x128xf32, #tpu.memory_space<vmem>>, vector<128x128xf32>
    %cst_9 = arith.constant dense<0.000000e+00> : vector<16x128xf32>
    %10 = tpu.matmul %8, %9, %cst_9 {dimension_numbers = #tpu.dot_dimension_numbers<[1], [0], [0], [1], [0, 0, 1, 1], [], []>} : vector<16x128xf32>, vector<128x128xf32>, vector<16x128xf32> -> vector<16x128xf32>
    %c0_10 = arith.constant 0 : index
    %c0_11 = arith.constant 0 : index
    %11 = vector.load %arg6[%c0_10, %c0_11] : memref<1x128xf32, #tpu.memory_space<vmem>>, vector<1x128xf32>
    %12 = vector.broadcast %11 : vector<1x128xf32> to vector<16x128xf32>
    %13 = arith.addf %10, %12 : vector<16x128xf32>
    %cst_12 = arith.constant 0.000000e+00 : f32
    %14 = vector.broadcast %cst_12 : f32 to vector<16x128xf32>
    %15 = arith.maximumf %13, %14 : vector<16x128xf32>
    %c0_13 = arith.constant 0 : index
    %c0_14 = arith.constant 0 : index
    %16 = vector.load %arg7[%c0_13, %c0_14] : memref<128x128xf32, #tpu.memory_space<vmem>>, vector<128x128xf32>
    %cst_15 = arith.constant dense<0.000000e+00> : vector<16x128xf32>
    %17 = tpu.matmul %15, %16, %cst_15 {dimension_numbers = #tpu.dot_dimension_numbers<[1], [0], [0], [1], [0, 0, 1, 1], [], []>} : vector<16x128xf32>, vector<128x128xf32>, vector<16x128xf32> -> vector<16x128xf32>
    %c0_16 = arith.constant 0 : index
    %c0_17 = arith.constant 0 : index
    %18 = vector.load %arg8[%c0_16, %c0_17] : memref<1x128xf32, #tpu.memory_space<vmem>>, vector<1x128xf32>
    %19 = vector.broadcast %18 : vector<1x128xf32> to vector<16x128xf32>
    %20 = arith.addf %17, %19 : vector<16x128xf32>
    %21 = vector.shape_cast %20 : vector<16x128xf32> to vector<1x16x128xf32>
    %c0_18 = arith.constant 0 : index
    %c0_19 = arith.constant 0 : index
    %c0_20 = arith.constant 0 : index
    %22 = vector.load %arg4[%c0_18, %c0_19, %c0_20] : memref<1x16x1xf32, #tpu.memory_space<vmem>>, vector<1x16x1xf32>
    %23 = vector.broadcast %22 : vector<1x16x1xf32> to vector<1x16x128xf32>
    %24 = arith.mulf %21, %23 : vector<1x16x128xf32>
    %c0_21 = arith.constant 0 : index
    %c0_22 = arith.constant 0 : index
    %c0_23 = arith.constant 0 : index
    %25 = vector.load %arg9[%c0_21, %c0_22, %c0_23] : memref<1x16x128xf32, #tpu.memory_space<vmem>>, vector<1x16x128xf32>
    tpu.vector_store %arg9[%c0_21, %c0_22, %c0_23], %24 {strides = array<i32>} : memref<1x16x128xf32, #tpu.memory_space<vmem>>, vector<1x16x128xf32>,
    return
  }
  func.func @transform_0(%arg0: i32) -> i32 {
    %c0_i32 = arith.constant 0 : i32
    %c0_i32_0 = arith.constant 0 : i32
    return %c0_i32 : i32
  }
  func.func @transform_1(%arg0: i32) -> (i32, i32, i32) {
    %c0_i32 = arith.constant 0 : i32
    %c0_i32_0 = arith.constant 0 : i32
    %c0_i32_1 = arith.constant 0 : i32
    return %arg0, %c0_i32, %c0_i32_0 : i32, i32, i32
  }
  func.func @transform_2(%arg0: i32) -> (i32, i32, i32) {
    %c0_i32 = arith.constant 0 : i32
    %c0_i32_0 = arith.constant 0 : i32
    %c0_i32_1 = arith.constant 0 : i32
    return %arg0, %c0_i32, %c0_i32_0 : i32, i32, i32
  }
  func.func @transform_3(%arg0: i32) -> (i32, i32, i32) {
    %c0_i32 = arith.constant 0 : i32
    %c0_i32_0 = arith.constant 0 : i32
    %c0_i32_1 = arith.constant 0 : i32
    return %arg0, %c0_i32, %c0_i32_0 : i32, i32, i32
  }
  func.func @transform_4(%arg0: i32) -> (i32, i32) {
    %c0_i32 = arith.constant 0 : i32
    %c0_i32_0 = arith.constant 0 : i32
    %c0_i32_1 = arith.constant 0 : i32
    return %c0_i32, %c0_i32_0 : i32, i32
  }
  func.func @transform_5(%arg0: i32) -> (i32, i32) {
    %c0_i32 = arith.constant 0 : i32
    %c0_i32_0 = arith.constant 0 : i32
    %c0_i32_1 = arith.constant 0 : i32
    return %c0_i32, %c0_i32_0 : i32, i32
  }
  func.func @transform_6(%arg0: i32) -> (i32, i32) {
    %c0_i32 = arith.constant 0 : i32
    %c0_i32_0 = arith.constant 0 : i32
    %c0_i32_1 = arith.constant 0 : i32
    return %c0_i32, %c0_i32_0 : i32, i32
  }
  func.func @transform_7(%arg0: i32) -> (i32, i32) {
    %c0_i32 = arith.constant 0 : i32
    %c0_i32_0 = arith.constant 0 : i32
    %c0_i32_1 = arith.constant 0 : i32
    return %c0_i32, %c0_i32_0 : i32, i32
  }
  func.func @transform_8(%arg0: i32) -> (i32, i32, i32) {
    %c0_i32 = arith.constant 0 : i32
    %c0_i32_0 = arith.constant 0 : i32
    %c0_i32_1 = arith.constant 0 : i32
    return %arg0, %c0_i32, %c0_i32_0 : i32, i32, i32
  }
}

</mosaic_0001>

<bundles_post_ra>
// kernel: tpu_custom_call.1
= control target key start
LH: loop header
LB: loop body
LE: loop exit
PB: predicated region body
PF: predicated region fallthrough
CT: control target
= control target key end

     0   :  { %s1612_s0 = inlined_call_operand.<no memory space> [shape: f32[1], index: 0, kind: input, shape index: {}]   ;;  %s1613_s1 = inlined_call_operand.vmem [shape: f32[2,16,128], index: 1, kind: input, shape index: {}]   ;;  %s1614_s2 = inlined_call_operand.hbm [shape: f32[2,16,16], index: 2, kind: input, shape index: {}]   ;;  %s1615_s3 = inlined_call_operand.vmem [shape: f32[2,16,1], index: 3, kind: input, shape index: {}]   ;;  %s1616_s4 = inlined_call_operand.hbm [shape: f32[128,128], index: 4, kind: input, shape index: {}]   ;;  %s1617_s5 = inlined_call_operand.vmem [shape: f32[1,128], index: 5, kind: input, shape index: {}]   ;;  %s1618_s6 = inlined_call_operand.hbm [shape: f32[128,128], index: 6, kind: input, shape index: {}]   ;;  %s1619_s7 = inlined_call_operand.vmem [shape: f32[1,128], index: 7, kind: input, shape index: {}]   ;;  %s1620_s8 = inlined_call_operand.hbm [shape: f32[2,16,128], index: 8, kind: output, shape index: {}]  }
   0x1   :  { %13 = sst [smem:[#allocation2]] %s1612_s0 }
   0x2   :  { %14 = vsyncpa [#allocation4], 0 }
   0x3   :  { %16 = vsyncpa [#allocation4 + $0x1], 0 }
   0x4   :  { %17 = vsyncpa [#allocation7], 0 }
   0x5   :  { %18 = vsyncpa [#allocation5], 0 }
   0x6   :  { %20 = vsyncpa [#allocation5 + $0x1], 0  ;;  %s1334_s29 = smov 0   ;;  %s1336_s30 = smov 0  }
   0x7   :  { %s1338_s9 = smov 0   ;;  %s1340_s10 = smov 0  }
   0x8 LB: > { %s1355_s0 = sadd.s32 4294967295, %s1275_s10   ;;  %s831_s11 = sadd.s32 4294967294, %s1275_s10   ;;  %s1275_s10 = sphi %s1340_s10, %s1642_s10   ;;  %s1271_s9 = sphi %s1338_s9, %s1641_s9   ;;  %s1267_s30 = sphi %s1336_s30, %s1640_s30   ;;  %s1263_s29 = sphi %s1334_s29, %s1639_s29  }
   0x9   : > { %p93_p0 = scmp.ne.s32.totalorder %s1267_s30, %s1263_s29  ;;  %p1621_p1 = scmp.eq.s32.totalorder %s1355_s0, 0 }
   0xa   : > { %p233_p3 = scmp.eq.s32.totalorder %s831_s11, 1  ;;  %p832_p5 = scmp.ge.s32.totalorder %s1275_s10, 1 }
   0xb   : > { %p1364_p4 = por %p1621_p1, %p93_p0  ;;  %p240_p7 = scmp.lt.s32.totalorder %s1275_s10, 3 }
   0xc   : > { %p1369_p6 = por %p233_p3, %p93_p0  ;;  %s1277_s15 = smov [#allocation6]  }
   0xd   : > { %s1625_s12 = scalar_select %p1364_p4, 1, 0 }
   0xe   : > { %s1626_s13 = scalar_select %p1369_p6, 1, 0 }
   0xf   : > { %p1374_p8 = pnand %p832_p5, %p240_p7  ;;  %s255_s16 = sshll.u32 %s1277_s15, 4  ;;  %s1378_s16 = int_to_ptr.vmem [resolvable:$true] %s255_s16 }
  0x10   : > { %s1278_s18 = smov [#allocation8]   ;;  %s1119_s22 = scalar_lea.hbm %s1616_s4, 2048 }
  0x11   : > { %p1058_p9 = pneg %p1374_p8  ;;  %s271_s19 = sshll.u32 %s1278_s18, 4  ;;  %s1389_s19 = int_to_ptr.vmem [resolvable:$true] %s271_s19 }
  0x12   : > { %p1120_p12 = scmp.ne.s32.totalorder %s1616_s4, %s1119_s22  ;;  %p1126_p5 = scmp.lt.u32.totalorder %s1119_s22, %s1616_s4 }
  0x13   : > { %p1385_p11 = pnand %p1058_p9, %p1621_p1 }
  0x15   : > { %p1121_p13 = pneg %p1385_p11 }
  0x17   : > { %p1122_p0 = pnand %p1121_p13, %p1120_p12 }
  0x19   : > { %p1123_p3 = pneg %p1122_p0 }
  0x1b   : > { %p1128_p7 = pnand %p1126_p5, %p1123_p3 }
  0x1d   : > { %1131 = shalt.err (!%p1128_p7)
}
  0x1e   : > { %s1132_s27 = scalar_lea.vmem %s1378_s16, 2048  ;;  %p1140_p2 = scmp.lt.s32.totalorder %s1378_s16, %s1378_s16 }
  0x1f   : > { %p1133_p9 = scmp.ne.s32.totalorder %s1378_s16, %s1132_s27  ;;  %p1141_p12 = scmp.lt.s32.totalorder %s1132_s27, %s1132_s27 }
  0x21   : > { %p1135_p10 = pnand %p1133_p9, %p1121_p13  ;;  %p1142_p0 = por %p1141_p12, %p1140_p2 }
  0x23   : > { %p1136_p1 = pneg %p1135_p10 }
  0x25   : > { %p1143_p6 = pnand %p1142_p0, %p1136_p1 }
  0x27   : > { %1146 = shalt.err (!%p1143_p6)
}
  0x28   : > { %s1622_s28 = smov 128   ;;  %s1280_s11 = smov 8  }
  0x29   : > { %1061 = dma.hbm_to_vmem [thread:$0]  (!%p1385_p11), %s1616_s4, 2048, %s1378_s16, [#allocation7], %s1622_s28, %s1622_s28, %s1280_s11  }
  0x2a   : > { %s1147_s22 = scalar_lea.hbm %s1618_s6, 2048 }
  0x2b   : > { %p1148_p1 = scmp.ne.s32.totalorder %s1618_s6, %s1147_s22  ;;  %p1154_p10 = scmp.lt.u32.totalorder %s1147_s22, %s1618_s6 }
  0x2d   : > { %p1150_p2 = pnand %p1148_p1, %p1121_p13 }
  0x2f   : > { %p1151_p6 = pneg %p1150_p2 }
  0x31   : > { %p1156_p3 = pnand %p1154_p10, %p1151_p6 }
  0x33   : > { %1159 = shalt.err (!%p1156_p3)
}
  0x34   : > { %s1160_s16 = scalar_lea.vmem %s1389_s19, 2048  ;;  %p1168_p12 = scmp.lt.s32.totalorder %s1389_s19, %s1389_s19 }
  0x35   : > { %p1161_p5 = scmp.ne.s32.totalorder %s1389_s19, %s1160_s16  ;;  %p1169_p0 = scmp.lt.s32.totalorder %s1160_s16, %s1160_s16 }
  0x37   : > { %p1163_p7 = pnand %p1161_p5, %p1121_p13  ;;  %p1170_p1 = por %p1169_p0, %p1168_p12 }
  0x39   : > { %p1164_p9 = pneg %p1163_p7 }
  0x3b   : > { %p1171_p2 = pnand %p1170_p1, %p1164_p9 }
  0x3d   : > { %1174 = shalt.err (!%p1171_p2)
}
  0x3e   : > { %1064 = dma.hbm_to_vmem [thread:$0]  (!%p1385_p11), %s1618_s6, 2048, %s1389_s19, [#allocation7], %s1622_s28, %s1622_s28, %s1280_s11  }
  0x3f   : > { %s1450_s17 = sadd.s32 1, %s1275_s10   ;;  %s80_s18 = sadd.s32 1, %s1271_s9 }
  0x40   : > { %s77_s20 = ssub.s32 %s1275_s10, %s1450_s17  ;;  %p87_p13 = scmp.ne.s32.totalorder %s1271_s9, %s1267_s30 }
  0x41   : > { %p78_p6 = scmp.eq.s32.totalorder %s77_s20, 0  ;;  %p88_p10 = scmp.eq.s32.totalorder %s1275_s10, 0 }
  0x42   : > { %p1629_p3 = scmp.eq.s32.totalorder %s1355_s0, 1  ;;  %p1075_p7 = scmp.lt.s32.totalorder %s1275_s10, 2 }
  0x43   : > { %s1466_s22 = scalar_select %p78_p6, %s1271_s9, %s80_s18  }
  0x44   : > { %p1460_p5 = por %p1629_p3, %p87_p13  ;;  %p89_p9 = por %p88_p10, %p87_p13 }
  0x45   : > { %s296_s23 = sand.u32 1, %s1271_s9   ;;  %s857_s19 = sshll.u32 %s1275_s10, 8 }
  0x46   : > { %s1630_s21 = scalar_select %p1460_p5, 1, 0 }
  0x47   : > { %s836_s24 = sshll.u32 %s296_s23, 4  ;;  %s1473_s16 = scalar_lea.hbm %s1614_s2, %s857_s19 }
  0x48   : > { %s300_s27 = scalar_lea.vmem [#allocation3], %s836_s24  ;;  %p1477_p11 = pnand %p1075_p7, %p89_p9 }
  0x49   : > { %s307_s15 = sshll.u32 %s300_s27, 4  ;;  %s1481_s20 = scalar_lea.sflag [#allocation4], %s296_s23  ;;  %s1475_s15 = int_to_ptr.vmem [resolvable:$true] %s307_s15 }
  0x4a   : > { %s1175_s28 = scalar_lea.hbm %s1473_s16, 256  ;;  %p1177_p0 = pneg %p1477_p11 }
  0x4b   : > { %p1176_p12 = scmp.ne.s32.totalorder %s1473_s16, %s1175_s28  ;;  %s1180_s25 = scalar_lea.hbm %s1614_s2, 512 }
  0x4c   : > { %p1181_p13 = scmp.lt.u32.totalorder %s1473_s16, %s1614_s2  ;;  %p1182_p6 = scmp.lt.u32.totalorder %s1180_s25, %s1175_s28 }
  0x4d   : > { %p1178_p1 = pnand %p1177_p0, %p1176_p12  ;;  %p1184_p3 = scmp.lt.u32.totalorder %s1175_s28, %s1473_s16 }
  0x4e   : > { %p1183_p10 = por %p1182_p6, %p1181_p13 }
  0x4f   : > { %p1179_p2 = pneg %p1178_p1 }
  0x50   : > { %p1185_p7 = por %p1184_p3, %p1183_p10 }
  0x52   : > { %p1186_p9 = pnand %p1185_p7, %p1179_p2 }
  0x54   : > { %1189 = shalt.err (!%p1186_p9)
}
  0x55   : > { %s1190_s23 = scalar_lea.vmem %s1475_s15, 256  ;;  %s1281_s24 = smov [#allocation3]  }
  0x56   : > { %p1191_p12 = scmp.ne.s32.totalorder %s1475_s15, %s1190_s23  ;;  %s1195_s19 = sshll.u32 %s1281_s24, 4  ;;  %s1196_s19 = int_to_ptr.vmem [resolvable:$false] %s1195_s19 }
  0x57   : > { %s1197_s26 = scalar_lea.vmem %s1196_s19, 512  ;;  %p1198_p4 = scmp.lt.s32.totalorder %s1475_s15, %s1196_s19 }
  0x58   : > { %p1193_p1 = pnand %p1191_p12, %p1177_p0  ;;  %p1199_p13 = scmp.lt.s32.totalorder %s1197_s26, %s1190_s23 }
  0x5a   : > { %p1194_p5 = pneg %p1193_p1  ;;  %p1200_p6 = por %p1199_p13, %p1198_p4 }
  0x5c   : > { %p1201_p10 = pnand %p1200_p6, %p1194_p5 }
  0x5e   : > { %1204 = shalt.err (!%p1201_p10)
}
  0x5f   : > { %s1632_s28 = smov 128   ;;  %327 = sbr.rel (%p1374_p8) target bundleno = 785 (0x311), region = 52 }
  0x60   : > { %1068 = dma.hbm_to_vmem [thread:$0]  (!%p1477_p11), %s1473_s16, 256, %s1475_s15, %s1481_s20, %s1632_s28, %s1632_s28, %s1280_s11  }
  0x61   : > { %s1515_s25 = sand.u32 (!%p1374_p8), 1, %s1267_s30   ;;  %p1633_p4 = scmp.ne.s32.totalorder (!%p1374_p8), %s1625_s12, 0 }
  0x62   : > { %s840_s27 = sshll.u32 (!%p1374_p8), %s1515_s25, 4  ;;  %s330_s23 = scalar_lea.sflag (!%p1374_p8), [#allocation4], %s1515_s25 }
  0x63   : > { %s333_s18 = scalar_lea.vmem (!%p1374_p8), [#allocation3], %s840_s27 }
  0x66   : > { %1250 = dma.done.wait (%p1633_p4), %s330_s23, 256  }
  0x67   : > { %1252 = vsyncadd (%p1633_p4), %s330_s23, 4294967040  ;;  %p1634_p5 = scmp.eq.s32.totalorder %s1355_s0, 0 }
  0x69   : > { %1254 = dma.done.wait (%p1634_p5), [#allocation7], 4096   ;;  %p1635_p8 = pmov %p1634_p5 }
  0x6a   : > { %p384_p11 = scmp.lt.s32.totalorder %s1355_s0, 1  ;;  %vm398_vm0 = vcmask 130048   ;;  %v396_v2 = vld [vmem:[%s333_s18] sm:$0xff]  ;;  %v488_v5 = vld [vmem:[#allocation6 + $0x8] sm:$0xff]  ;;  %v490_v8 = vld [vmem:[#allocation6 + $0x18] sm:$0xff]  ;;  %s480_s20 = sld [smem:[#allocation2]] }
  0x6b   : > { %1256 = vsyncadd (%p1635_p8), [#allocation7], 4294963200  ;;  %905 = vmatprep.mubr.msk.f32.mxu0 %vm398_vm0, %v396_v2  ;;  %v487_v4 = vld [vmem:[#allocation6] sm:$0xff]  ;;  %v489_v7 = vld [vmem:[#allocation6 + $0x10] sm:$0xff]  ;;  %v1282_v60 = vmov 0   ;;  %s383_s16 = scalar_lea.vmem [#allocation9], %s840_s27 }
  0x6c   : > { %s1531_s14 = scalar_select %p384_p11, %s1355_s0, 1  ;;  %v982_v6 = vpack.c.bf16 %v488_v5, %v487_v4  ;;  %v986_v9 = vpack.c.bf16 %v490_v8, %v489_v7  ;;  %v491_v10 = vld [vmem:[#allocation6 + $0x20] sm:$0xff]  ;;  %v492_v11 = vld [vmem:[#allocation6 + $0x28] sm:$0xff]  ;;  %v493_v14 = vld [vmem:[#allocation6 + $0x30] sm:$0xff]  ;;  %1118 = vset.pattern.permute.xlu0 %v1282_v60 }
  0x6d   : > { %v397_v12 = vld [vmem:[%s333_s18 + $0x8] sm:$0xff]  ;;  %v990_v13 = vpack.c.bf16 %v492_v11, %v491_v10  ;;  %v495_v17 = vld [vmem:[#allocation6 + $0x40] sm:$0xff]  ;;  %v497_v20 = vld [vmem:[#allocation6 + $0x50] sm:$0xff]  ;;  %s715_s15 = sshll.u32 %s383_s16, 4  ;;  %s702_s27 = scalar_lea.sflag [#allocation5], %s1515_s25  ;;  %s1563_s15 = int_to_ptr.vmem [resolvable:$true] %s715_s15 }
  0x6e   : > { %s858_s11 = sshll.u32 %s1531_s14, 4  ;;  %983 = vmatprep.subr.bf16.mxu1 %v982_v6  ;;  %v494_v15 = vld [vmem:[#allocation6 + $0x38] sm:$0xff]  ;;  %v496_v18 = vld [vmem:[#allocation6 + $0x48] sm:$0xff]  ;;  %v499_v23 = vld [vmem:[#allocation6 + $0x60] sm:$0xff]  ;;  %p1636_p2 = scmp.ne.s32.totalorder %s1630_s21, 0 }
  0x6f   : > { %s388_s12 = scalar_lea.vmem %s1613_s1, %s858_s11  ;;  %985 = vmatpush3.bf16.msra.mxu1 %v982_v6  ;;  %v994_v16 = vpack.c.bf16 %v494_v15, %v493_v14  ;;  %v998_v19 = vpack.c.bf16 %v496_v18, %v495_v17  ;;  %v498_v21 = vld [vmem:[#allocation6 + $0x58] sm:$0xff]  ;;  %v500_v24 = vld [vmem:[#allocation6 + $0x68] sm:$0xff]  ;;  %v501_v26 = vld [vmem:[#allocation6 + $0x70] sm:$0xff]  ;;  %s393_s28 = scalar_lea.vmem %s1615_s3, %s858_s11 }
  0x70   : > { %v1539_v0 = vld [vmem:[%s388_s12] sm:$0xff]  ;;  %v1541_v1 = vld [vmem:[%s388_s12 + $0x8] sm:$0xff]  ;;  %987 = vmatprep.subr.bf16.mxu1 %v986_v9  ;;  %v1002_v22 = vpack.c.bf16 %v498_v21, %v497_v20  ;;  %v1006_v25 = vpack.c.bf16 %v500_v24, %v499_v23  ;;  %v502_v27 = vld [vmem:[#allocation6 + $0x78] sm:$0xff]  ;;  %s481_s24 = sadd.f32 1.0, %s480_s20  ;;  %s860_s12 = sshll.u32 %s1355_s0, 8 }
  0x71   : > { %v978_v3 = vpack.c.bf16 %v1541_v1, %v1539_v0  ;;  %v1010_v28 = vpack.c.bf16 %v502_v27, %v501_v26  ;;  %v587_v29 = vld [vmem:[#allocation8] sm:$0xff]  ;;  %v588_v30 = vld [vmem:[#allocation8 + $0x8] sm:$0xff]  ;;  %v589_v31 = vld [vmem:[#allocation8 + $0x10] sm:$0xff]  ;;  %s1568_s19 = scalar_lea.hbm %s1620_s8, %s860_s12  ;;  %s1205_s0 = scalar_lea.vmem %s1563_s15, 256 }
  0x72   : > { %v1014_v32 = vpack.c.bf16 %v588_v30, %v587_v29  ;;  %v590_v33 = vld [vmem:[#allocation8 + $0x18] sm:$0xff]  ;;  %v591_v35 = vld [vmem:[#allocation8 + $0x20] sm:$0xff]  ;;  %v592_v36 = vld [vmem:[#allocation8 + $0x28] sm:$0xff]  ;;  %v482_v50 = vstv %s481_s24  ;;  %p1206_p0 = scmp.ne.s32.totalorder %s1563_s15, %s1205_s0  ;;  %s1283_s26 = smov [#allocation9]  }
  0x73   : > { %979 = vmatprep.subr.bf16.mxu0 %v978_v3  ;;  %989 = vmatpush3.bf16.msra.mxu1 %v986_v9  ;;  %v1018_v34 = vpack.c.bf16 %v590_v33, %v589_v31  ;;  %v1022_v37 = vpack.c.bf16 %v592_v36, %v591_v35  ;;  %v593_v38 = vld [vmem:[#allocation8 + $0x30] sm:$0xff]  ;;  %v594_v39 = vld [vmem:[#allocation8 + $0x38] sm:$0xff]  ;;  %v595_v41 = vld [vmem:[#allocation8 + $0x40] sm:$0xff]  ;;  %v483_v51 = vmul.f32 %v482_v50, %v1539_v0 }
  0x74   : > { %981 = vmatpush3.bf16.msra.mxu0 %v978_v3  ;;  %991 = vmatprep.subr.bf16.mxu1 %v990_v13  ;;  %v1026_v40 = vpack.c.bf16 %v594_v39, %v593_v38  ;;  %v596_v42 = vld [vmem:[#allocation8 + $0x48] sm:$0xff]  ;;  %v597_v44 = vld [vmem:[#allocation8 + $0x50] sm:$0xff]  ;;  %v598_v45 = vld [vmem:[#allocation8 + $0x58] sm:$0xff]  ;;  %v484_v52 = vmul.f32 %v482_v50, %v1541_v1  ;;  %p1207_p3 = pnand %p1206_p0, %p1636_p2 }
  0x75   : > { %1015 = vmatprep.subr.bf16.mxu0 %v1014_v32  ;;  %v1030_v43 = vpack.c.bf16 %v596_v42, %v595_v41  ;;  %v1034_v46 = vpack.c.bf16 %v598_v45, %v597_v44  ;;  %v599_v47 = vld [vmem:[#allocation8 + $0x60] sm:$0xff]  ;;  %v600_v48 = vld [vmem:[#allocation8 + $0x68] sm:$0xff]  ;;  %v601_v57 = vld [vmem:[#allocation8 + $0x70] sm:$0xff] }
  0x76   : > { %v1038_v49 = vpack.c.bf16 %v600_v48, %v599_v47  ;;  %v602_v58 = vld [vmem:[#allocation8 + $0x78] sm:$0xff]  ;;  %v685_v61 = vld [vmem:[%s393_s28] sm:$0xff]  ;;  %v686_v62 = vld [vmem:[%s393_s28 + $0x8] sm:$0xff]  ;;  %p1208_p7 = pneg %p1207_p3  ;;  %s1209_s28 = sshll.u32 %s1283_s26, 4  ;;  %s1210_s28 = int_to_ptr.vmem [resolvable:$false] %s1209_s28 }
  0x77   : > { %906 = vmatmul.mubr.msk.f32.vlgmr.msra.gmra.mrb[0].mxu0 %vm398_vm0, %v397_v12  ;;  %993 = vmatpush3.bf16.msra.mxu1 %v990_v13  ;;  %v1042_v59 = vpack.c.bf16 %v602_v58, %v601_v57  ;;  %v850_v63 = vld [vmem:[%s1617_s5] ss:$0 sm:$0xff]  ;;  %s1211_s23 = scalar_lea.vmem %s1210_s28, 512  ;;  %p1212_p9 = scmp.lt.s32.totalorder %s1563_s15, %s1210_s28 }
  0x78   : > { %995 = vmatprep.subr.bf16.mxu1 %v994_v16  ;;  %1017 = vmatpush3.bf16.msra.mxu0 %v1014_v32  ;;  %v851_v7 = vld [vmem:[%s1619_s7] ss:$0 sm:$0xff]  ;;  %p1213_p12 = scmp.lt.s32.totalorder %s1211_s23, %s1205_s0 }
  0x79   : > { %1019 = vmatprep.subr.bf16.mxu0 %v1018_v34  ;;  %689 = vperm.xlu0 %1118, %v685_v61  }
  0x7a   : > { %p1214_p1 = por %p1213_p12, %p1212_p9 }
  0x7b   : > { %997 = vmatpush3.bf16.msra.mxu1 %v994_v16 }
  0x7c   : > { %999 = vmatprep.subr.bf16.mxu1 %v998_v19  ;;  %1021 = vmatpush3.bf16.msra.mxu0 %v1018_v34  ;;  %p1215_p13 = pnand %p1214_p1, %p1208_p7 }
  0x7d   : > { %1023 = vmatprep.subr.bf16.mxu0 %v1022_v37  ;;  %694 = vperm.xlu0 %1118, %v686_v62  }
  0x7f   : > { %1001 = vmatpush3.bf16.msra.mxu1 %v998_v19 }
  0x80   : > { %1003 = vmatprep.subr.bf16.mxu1 %v1002_v22  ;;  %1025 = vmatpush3.bf16.msra.mxu0 %v1022_v37 }
  0x81   : > { %1027 = vmatprep.subr.bf16.mxu0 %v1026_v40 }
  0x83   : > { %1005 = vmatpush3.bf16.msra.mxu1 %v1002_v22 }
  0x84   : > { %1007 = vmatprep.subr.bf16.mxu1 %v1006_v25  ;;  %1029 = vmatpush3.bf16.msra.mxu0 %v1026_v40 }
  0x85   : > { %1031 = vmatprep.subr.bf16.mxu0 %v1030_v43 }
  0x87   : > { %1009 = vmatpush3.bf16.msra.mxu1 %v1006_v25 }
  0x88   : > { %1011 = vmatprep.subr.bf16.mxu1 %v1010_v28  ;;  %1033 = vmatpush3.bf16.msra.mxu0 %v1030_v43 }
  0x89   : > { %1035 = vmatprep.subr.bf16.mxu0 %v1034_v46 }
  0x8b   : > { %1013 = vmatpush3.bf16.msra.mxu1 %v1010_v28 }
  0x8c   : > { %1037 = vmatpush3.bf16.msra.mxu0 %v1034_v46 }
  0x8d   : > { %1039 = vmatprep.subr.bf16.mxu0 %v1038_v49 }
  0x90   : > { %1041 = vmatpush3.bf16.msra.mxu0 %v1038_v49 }
  0x91   : > { %1043 = vmatprep.subr.bf16.mxu0 %v1042_v59 }
  0x94   : > { %1045 = vmatpush3.bf16.msra.mxu0 %v1042_v59 }
  0xf8   : > { %v690_v6 = vpop.permute.xlu0 %689 }
  0xfc   : > { %v695_v11 = vpop.permute.xlu0 %694 }
 0x14a   : > { %v907_v53 = vpop.f32.mrb[0].mxu0 }
 0x14b   : > { %v471_v54 = vpop.f32.mrb[1].mxu0  ;;  %v486_v56 = vadd.f32 %v907_v53, %v484_v52 }
 0x14c   : > { %v485_v55 = vadd.f32 %v483_v51, %v471_v54 }
 0x14e   : > { %940 = vmatprep.mubr.f32.mxu1 %v485_v55 }
 0x14f   : > { %941 = vmatmul.mubr.f32.vlgmr.msra.gmra.mrb[0].mxu1 %v486_v56 }
 0x222   : > { %v942_v0 = vpop.f32.mrb[0].mxu1 }
 0x223   : > { %v582_v1 = vadd.f32 %v942_v0, %v850_v63  ;;  %v576_v2 = vpop.f32.mrb[1].mxu1 }
 0x224   : > { %v577_v3 = vadd.f32 %v850_v63, %v576_v2 }
 0x225   : > { %v586_v5 = vmax.f32 %v582_v1, 0.0 }
 0x226   : > { %v585_v4 = vmax.f32 %v577_v3, 0.0 }
 0x228   : > { %975 = vmatprep.mubr.f32.mxu0 %v585_v4 }
 0x229   : > { %976 = vmatmul.mubr.f32.vlgmr.msra.gmra.mrb[2].mxu0 %v586_v5 }
 0x2fc   : > { %v977_v8 = vpop.f32.mrb[2].mxu0 }
 0x2fd   : > { %v682_v9 = vadd.f32 %v977_v8, %v851_v7  ;;  %v676_v10 = vpop.f32.mrb[3].mxu0 }
 0x2fe   : > { %v677_v12 = vadd.f32 %v851_v7, %v676_v10 }
 0x2ff   : > { %v698_v13 = vmul.f32 %v695_v11, %v682_v9 }
 0x300   : > { %v697_v14 = vmul.f32 %v690_v6, %v677_v12 }
 0x301   : > { %700 = vst [vmem:[%s383_s16 + $0x8] sm:$0xff] %v698_v13 }
 0x302   : > { %699 = vst [vmem:[%s383_s16] sm:$0xff] %v697_v14 }
 0x303   : > { %1218 = shalt.err (!%p1215_p13)
}
 0x304   : > { %s1219_s18 = scalar_lea.hbm %s1568_s19, 256  ;;  %s1223_s16 = scalar_lea.hbm %s1620_s8, 512 }
 0x305   : > { %p1220_p6 = scmp.ne.s32.totalorder %s1568_s19, %s1219_s18  ;;  %p1224_p5 = scmp.lt.u32.totalorder %s1568_s19, %s1620_s8 }
 0x306   : > { %p1225_p8 = scmp.lt.u32.totalorder %s1223_s16, %s1219_s18  ;;  %p1227_p0 = scmp.lt.u32.totalorder %s1219_s18, %s1568_s19 }
 0x307   : > { %p1221_p10 = pnand %p1220_p6, %p1636_p2 }
 0x308   : > { %p1226_p11 = por %p1225_p8, %p1224_p5 }
 0x309   : > { %p1222_p4 = pneg %p1221_p10 }
 0x30a   : > { %p1228_p3 = por %p1227_p0, %p1226_p11 }
 0x30c   : > { %p1229_p7 = pnand %p1228_p3, %p1222_p4 }
 0x30e   : > { %1232 = shalt.err (!%p1229_p7)
}
 0x30f   : > { %s1284_s24 = smov 128   ;;  %s1285_s0 = smov 8  }
 0x310   : > { %1056 = dma.vmem_to_hbm [thread:$0]  (%p1636_p2), %s1563_s15, 256, %s1568_s19, %s702_s27, %s1284_s24, %s1284_s24, %s1285_s0  }
 0x311 PF: > { %s730_s26 = sand.u32 1, %s1263_s29   ;;  %p1637_p9 = scmp.ne.s32.totalorder %s1626_s13, 0 }
 0x312   : > { %p1638_p12 = scmp.ge.s32.totalorder %s1275_s10, 2  ;;  %s731_s28 = scalar_lea.sflag [#allocation5], %s730_s26 }
 0x314   : > { %p1070_p1 = pnand %p1638_p12, %p1637_p9 }
 0x316   : > { %1258 = dma.done.wait (!%p1070_p1), %s731_s28, 256  }
 0x317   : > { %1260 = vsyncadd (!%p1070_p1), %s731_s28, 4294967040  ;;  %p23_p13 = scmp.ge.s32.totalorder %s1450_s17, 4   ;;  %s1639_s29 = smov %s1267_s30 }
 0x318   : > { %s1640_s30 = smov %s1271_s9  ;;  %s1641_s9 = smov %s1466_s22 }
 0x319   : > { %s1642_s10 = smov %s1450_s17  ;;  %25 = sbr.rel (!%p23_p13) target bundleno = 8 (0x8), region = 111 }
 0x320   :  { %736 = vsyncpa [#allocation4], 1 }
 0x321   :  { %738 = vsyncpa [#allocation4 + $0x1], 1 }
 0x322   :  { %739 = vsyncpa [#allocation7], 1 }
 0x323   :  { %740 = vsyncpa [#allocation5], 1 }
 0x324   :  { %742 = vsyncpa [#allocation5 + $0x1], 1 }

</bundles_post_ra>
